<compile_context>
chip_gen: v7x
topology: tpu7x:2x2x1
jax: 0.10.0
libtpu: 0.0.40
codegen_flags: <defaults>
</compile_context>

<pallas_src>
import functools

import jax
import jax.numpy as jnp
from jax.experimental import pallas as pl
from jax.experimental.pallas import tpu as pltpu


# ---------------------------------------------------------------------------
# Per-generation / per-dtype tiling helpers
# ---------------------------------------------------------------------------
def _round_up(a, b):
    return (a + b - 1) // b * b


def _sublane_align(itemsize):
    # f32 -> 8, bf16 -> 16, int8/fp8 -> 32 (sub-32-bit dtypes pack along sublanes).
    return max(8, 8 * (4 // max(1, int(itemsize))))


def _tpu_config():
    """Pick live-VMEM budget / scoped limit per chip generation."""
    vmem_cap = 128 * 1024 * 1024
    try:
        info = pltpu.get_tpu_info()
        vmem_cap = int(getattr(info, "vmem_capacity_bytes", vmem_cap))
    except Exception:  # e.g. interpret mode / no TPU info available
        pass
    if vmem_cap <= 64 * 1024 * 1024:
        # v7x-class: 64 MiB VMEM per TensorCore, 2 TCs per chip.
        return dict(live_bytes=32 * 1024 * 1024,
                    vmem_limit=48 * 1024 * 1024,
                    multicore=True)
    # v5e / v6e: 128 MiB VMEM, single TensorCore.
    return dict(live_bytes=40 * 1024 * 1024,
                vmem_limit=64 * 1024 * 1024,
                multicore=False)


def _block_elems(itemsize, live_bytes):
    # Live VMEM per grid step ~= 2x input block + 2x output block (double-buffered,
    # input dtype) + ~3 block-sized f32 temporaries (x.astype(f32), xc, result).
    per_elem = 4 * int(itemsize) + 3 * 4
    return max(1024, live_bytes // per_elem)


def _row_tile(m, c, itemsize, live_bytes, multi_step):
    """Row tile for the (M, C) channels_last kernels (C lives on the lane axis)."""
    sub = _sublane_align(itemsize)
    c_lanes = _round_up(c, 128)                       # VMEM lane padding
    budget = max(sub, _block_elems(itemsize, live_bytes) // c_lanes)
    if m <= budget:
        if multi_step and m >= 2 * sub:
            # Keep >= 2 grid steps: shards across v7x's two TCs + enables pipelining.
            return _round_up(-(-m // 2), sub)
        return m                                      # full dim -> no (8,) constraint
    return max(sub, (budget // sub) * sub)            # sublane-aligned tile


def _hw_tile(hw, c, itemsize, live_bytes, multi_step):
    """Spatial tile for the (N, C, HW) channels_first kernel (HW lives on lanes)."""
    sub = _sublane_align(itemsize)
    c_sub = _round_up(c, sub)                         # VMEM sublane padding
    budget = max(128, _block_elems(itemsize, live_bytes) // c_sub)
    if hw <= budget:
        if multi_step and hw >= 2 * 512:              # keep DMA segments >= 2 KiB
            return _round_up(-(-hw // 2), 128)
        return hw                                     # full dim -> fully contiguous DMA
    return max(128, (budget // 128) * 128)            # lane-aligned tile


# ---------------------------------------------------------------------------
# Kernels
# ---------------------------------------------------------------------------
def _ln_cl_kernel(x_ref, w_ref, b_ref, o_ref, *, eps):
    # x_ref: (tm, C); w_ref / b_ref: (1, C) f32; reduce over lanes (C).
    x = x_ref[...].astype(jnp.float32)
    mu = jnp.mean(x, axis=-1, keepdims=True)
    xc = x - mu
    var = jnp.mean(xc * xc, axis=-1, keepdims=True)
    inv = jax.lax.rsqrt(var + eps)
    o_ref[...] = (w_ref[...] * (xc * inv) + b_ref[...]).astype(o_ref.dtype)


def _ln_cl_packed_kernel(x_ref, w_ref, b_ref, seg_ref, o_ref, *, eps):
    # Lane-dense small-C path: x_ref is (tm, L) with L = (128//C)*C = 128 and every
    # lane row packing g = 128//C independent length-C segments.  seg_ref is the
    # (L, L) block-diagonal averaging matrix (entries 1/C within a segment), so
    # x @ seg broadcasts each segment mean across its own segment via the MXU.
    x = x_ref[...].astype(jnp.float32)
    seg = seg_ref[...]
    mu = jnp.dot(x, seg, preferred_element_type=jnp.float32,
                 precision=jax.lax.Precision.HIGHEST)
    xc = x - mu
    var = jnp.dot(xc * xc, seg, preferred_element_type=jnp.float32,
                  precision=jax.lax.Precision.HIGHEST)
    inv = jax.lax.rsqrt(var + eps)
    o_ref[...] = (w_ref[...] * (xc * inv) + b_ref[...]).astype(o_ref.dtype)


def _ln_cf_kernel(x_ref, w_ref, b_ref, o_ref, *, eps):
    # x_ref: (1, C, t_hw); w_ref / b_ref: (1, C, 1) f32; reduce over sublanes (C),
    # lane axis (t_hw) stays dense for unmasked stores.
    x = x_ref[...].astype(jnp.float32)
    mu = jnp.mean(x, axis=1, keepdims=True)
    xc = x - mu
    var = jnp.mean(xc * xc, axis=1, keepdims=True)
    inv = jax.lax.rsqrt(var + eps)
    o_ref[...] = (w_ref[...] * (xc * inv) + b_ref[...]).astype(o_ref.dtype)


# ---------------------------------------------------------------------------
# pallas_call wrappers
# ---------------------------------------------------------------------------
def _ln_channels_last(x2d, weight, bias, eps):
    M, C = x2d.shape
    cfg = _tpu_config()
    itemsize = x2d.dtype.itemsize

    # Lane-dense repack for small C (e.g. C=4): g rows per 128-lane vreg row.
    if 0 < C < 128 and 128 % C == 0 and M % (128 // C) == 0 and M >= (128 // C):
        g = 128 // C
        L = g * C  # == 128
        Mp = M // g
        xp = x2d.reshape(Mp, L)                                 # free reshape
        lane_seg = jnp.arange(L) // C
        seg = (lane_seg[:, None] == lane_seg[None, :]).astype(jnp.float32) / float(C)
        wp = jnp.tile(weight.astype(jnp.float32), g).reshape(1, L)
        bp = jnp.tile(bias.astype(jnp.float32), g).reshape(1, L)
        tm = _row_tile(Mp, L, itemsize, cfg["live_bytes"], multi_step=True)
        yp = pl.pallas_call(
            functools.partial(_ln_cl_packed_kernel, eps=float(eps)),
            out_shape=jax.ShapeDtypeStruct((Mp, L), x2d.dtype),
            grid_spec=pl.GridSpec(
                grid=(pl.cdiv(Mp, tm),),
                in_specs=[
                    pl.BlockSpec((tm, L), lambda i: (i, 0)),
                    pl.BlockSpec((1, L), lambda i: (0, 0)),   # resident weight
                    pl.BlockSpec((1, L), lambda i: (0, 0)),   # resident bias
                    pl.BlockSpec((L, L), lambda i: (0, 0)),   # resident seg matrix
                ],
                out_specs=pl.BlockSpec((tm, L), lambda i: (i, 0)),
            ),
            compiler_params=pltpu.CompilerParams(
                dimension_semantics=("parallel",),
                vmem_limit_bytes=cfg["vmem_limit"],
            ),
        )(xp, wp, bp, seg)
        return yp.reshape(M, C)

    # General path: C on the lane axis, reduce over lanes.
    tm = _row_tile(M, C, itemsize, cfg["live_bytes"], multi_step=True)
    w2 = weight.reshape(1, C).astype(jnp.float32)
    b2 = bias.reshape(1, C).astype(jnp.float32)
    return pl.pallas_call(
        functools.partial(_ln_cl_kernel, eps=float(eps)),
        out_shape=jax.ShapeDtypeStruct((M, C), x2d.dtype),
        grid_spec=pl.GridSpec(
            grid=(pl.cdiv(M, tm),),
            in_specs=[
                pl.BlockSpec((tm, C), lambda i: (i, 0)),
                pl.BlockSpec((1, C), lambda i: (0, 0)),
                pl.BlockSpec((1, C), lambda i: (0, 0)),
            ],
            out_specs=pl.BlockSpec((tm, C), lambda i: (i, 0)),
        ),
        compiler_params=pltpu.CompilerParams(
            dimension_semantics=("parallel",),
            vmem_limit_bytes=cfg["vmem_limit"],
        ),
    )(x2d, w2, b2)


def _ln_channels_first(x3d, weight, bias, eps):
    N, C, HW = x3d.shape
    cfg = _tpu_config()
    itemsize = x3d.dtype.itemsize
    # Only force an HW split when the batch axis alone would leave a 1-step grid
    # on a multi-TC chip (splitting HW makes the DMA strided, so avoid otherwise).
    t_hw = _hw_tile(HW, C, itemsize, cfg["live_bytes"],
                    multi_step=(cfg["multicore"] and N == 1))
    w3 = weight.reshape(1, C, 1).astype(jnp.float32)
    b3 = bias.reshape(1, C, 1).astype(jnp.float32)
    return pl.pallas_call(
        functools.partial(_ln_cf_kernel, eps=float(eps)),
        out_shape=jax.ShapeDtypeStruct((N, C, HW), x3d.dtype),
        grid_spec=pl.GridSpec(
            grid=(N, pl.cdiv(HW, t_hw)),
            in_specs=[
                pl.BlockSpec((1, C, t_hw), lambda n, j: (n, 0, j)),
                pl.BlockSpec((1, C, 1), lambda n, j: (0, 0, 0)),
                pl.BlockSpec((1, C, 1), lambda n, j: (0, 0, 0)),
            ],
            out_specs=pl.BlockSpec((1, C, t_hw), lambda n, j: (n, 0, j)),
        ),
        compiler_params=pltpu.CompilerParams(
            dimension_semantics=("parallel", "parallel"),
            vmem_limit_bytes=cfg["vmem_limit"],
        ),
    )(x3d, w3, b3)


# ---------------------------------------------------------------------------
# Module wrapper
# ---------------------------------------------------------------------------
class SamLayerNormPallas:
    """JAX/Pallas equivalent of the PyTorch SamLayerNorm module."""

    def __init__(self, normalized_shape, eps=1e-6, data_format="channels_last"):
        if data_format not in ["channels_last", "channels_first"]:
            raise NotImplementedError(f"Unsupported data format: {data_format}")
        self.eps = float(eps)
        self.data_format = data_format
        self.normalized_shape = (int(normalized_shape),)
        # Deterministic parameter init (matches nn.Parameter(torch.ones/zeros)).
        self.weight = jnp.ones((int(normalized_shape),), dtype=jnp.float32)
        self.bias = jnp.zeros((int(normalized_shape),), dtype=jnp.float32)

    def __call__(self, x):
        C = self.normalized_shape[0]
        if self.data_format == "channels_last":
            assert x.shape[-1] == C
            orig_shape = x.shape
            y2d = _ln_channels_last(x.reshape(-1, C), self.weight, self.bias, self.eps)
            return y2d.reshape(orig_shape)
        # channels_first: NCHW, normalize over axis 1 — no transposes, just a free
        # collapse of the trailing spatial dims.
        n, c, h, w = x.shape
        assert c == C
        y3d = _ln_channels_first(x.reshape(n, C, h * w), self.weight, self.bias, self.eps)
        return y3d.reshape(n, C, h, w)


# ---------------------------------------------------------------------------
# Pure-JAX references (match the PyTorch forward)
# ---------------------------------------------------------------------------
def _reference_channels_first(x, weight, bias, eps):
    xf = x.astype(jnp.float32)
    u = jnp.mean(xf, axis=1, keepdims=True)
    s = jnp.mean((xf - u) ** 2, axis=1, keepdims=True)
    y = (xf - u) / jnp.sqrt(s + eps)
    y = y.astype(x.dtype)
    return weight[:, None, None] * y + bias[:, None, None]


def _reference_channels_last(x, weight, bias, eps):
    xf = x.astype(jnp.float32)
    u = jnp.mean(xf, axis=-1, keepdims=True)
    s = jnp.mean((xf - u) ** 2, axis=-1, keepdims=True)
    y = (xf - u) / jnp.sqrt(s + eps)
    return (weight * y + bias).astype(x.dtype)


if __name__ == "__main__":
    key = jax.random.PRNGKey(0)
    k1, k2 = jax.random.split(key)

    # channels_first case: NCHW input, normalize over C
    C = 4
    x_cf = jax.random.normal(k1, (2, C, 16, 16), dtype=jnp.float32)
    ln_cf = SamLayerNormPallas(C, eps=1e-6, data_format="channels_first")
    out_cf = jax.block_until_ready(ln_cf(x_cf))
    ref_cf = _reference_channels_first(x_cf, ln_cf.weight, ln_cf.bias, ln_cf.eps)
    assert out_cf.shape == x_cf.shape and out_cf.dtype == x_cf.dtype
    assert jnp.allclose(out_cf, ref_cf, atol=1e-5, rtol=1e-5)

    # channels_last case: (..., C) input, normalize over last dim (lane-dense packed path)
    x_cl = jax.random.normal(k2, (2, 16, 16, C), dtype=jnp.float32)
    ln_cl = SamLayerNormPallas(C, eps=1e-6, data_format="channels_last")
    out_cl = jax.block_until_ready(ln_cl(x_cl))
    ref_cl = _reference_channels_last(x_cl, ln_cl.weight, ln_cl.bias, ln_cl.eps)
    assert out_cl.shape == x_cl.shape and out_cl.dtype == x_cl.dtype
    assert jnp.allclose(out_cl, ref_cl, atol=1e-5, rtol=1e-5)

    # channels_last with a large C (exercise the general lane-reduce path too)
    C2 = 256
    x_cl2 = jax.random.normal(k2, (2, 8, 8, C2), dtype=jnp.float32)
    ln_cl2 = SamLayerNormPallas(C2, eps=1e-6, data_format="channels_last")
    out_cl2 = jax.block_until_ready(ln_cl2(x_cl2))
    ref_cl2 = _reference_channels_last(x_cl2, ln_cl2.weight, ln_cl2.bias, ln_cl2.eps)
    assert jnp.allclose(out_cl2, ref_cl2, atol=1e-5, rtol=1e-5)

    print("KERNEL_OK")
</pallas_src>

<mosaic_0001>
module attributes {stable_mosaic.version = 11 : i64} {
  func.func @_ln_cf_kernel(%arg0: i32, %arg1: i32, %arg2: memref<1x4x256xf32, #tpu.memory_space<vmem>>, %arg3: memref<1x4x1xf32, #tpu.memory_space<vmem>>, %arg4: memref<1x4x1xf32, #tpu.memory_space<vmem>>, %arg5: memref<1x4x256xf32, #tpu.memory_space<vmem>>) attributes {dimension_semantics = [#tpu.dimension_semantics<parallel>, #tpu.dimension_semantics<parallel>], iteration_bounds = array<i64: 2, 1>, scalar_prefetch = 0 : i64, scratch_operands = 0 : i64, tpu.core_type = #tpu.core_type<tc>, window_params = [{transform_indices = @transform_0, window_bounds = array<i64: 1, 4, 256>}, {pipeline_mode = #tpu.pipeline_mode<synchronous>, transform_indices = @transform_1, window_bounds = array<i64: 1, 4, 1>}, {pipeline_mode = #tpu.pipeline_mode<synchronous>, transform_indices = @transform_2, window_bounds = array<i64: 1, 4, 1>}, {transform_indices = @transform_3, window_bounds = array<i64: 1, 4, 256>}]} {
    %c0 = arith.constant 0 : index
    %c0_0 = arith.constant 0 : index
    %c0_1 = arith.constant 0 : index
    %0 = vector.load %arg2[%c0, %c0_0, %c0_1] : memref<1x4x256xf32, #tpu.memory_space<vmem>>, vector<1x4x256xf32>
    %cst = arith.constant dense<0.000000e+00> : vector<1x256xf32>
    %1 = vector.multi_reduction <add>, %0, %cst [1] : vector<1x4x256xf32> to vector<1x256xf32>
    %2 = vector.shape_cast %1 : vector<1x256xf32> to vector<1x1x256xf32>
    %cst_2 = arith.constant 4.000000e+00 : f32
    %3 = vector.broadcast %cst_2 : f32 to vector<1x1x256xf32>
    %4 = arith.divf %2, %3 : vector<1x1x256xf32>
    %5 = vector.broadcast %4 : vector<1x1x256xf32> to vector<1x4x256xf32>
    %6 = arith.subf %0, %5 : vector<1x4x256xf32>
    %7 = arith.mulf %6, %6 : vector<1x4x256xf32>
    %cst_3 = arith.constant dense<0.000000e+00> : vector<1x256xf32>
    %8 = vector.multi_reduction <add>, %7, %cst_3 [1] : vector<1x4x256xf32> to vector<1x256xf32>
    %9 = vector.shape_cast %8 : vector<1x256xf32> to vector<1x1x256xf32>
    %cst_4 = arith.constant 4.000000e+00 : f32
    %10 = vector.broadcast %cst_4 : f32 to vector<1x1x256xf32>
    %11 = arith.divf %9, %10 : vector<1x1x256xf32>
    %cst_5 = arith.constant 9.99999997E-7 : f32
    %12 = vector.broadcast %cst_5 : f32 to vector<1x1x256xf32>
    %13 = arith.addf %11, %12 : vector<1x1x256xf32>
    %14 = math.rsqrt %13 : vector<1x1x256xf32>
    %c0_6 = arith.constant 0 : index
    %c0_7 = arith.constant 0 : index
    %c0_8 = arith.constant 0 : index
    %15 = vector.load %arg3[%c0_6, %c0_7, %c0_8] : memref<1x4x1xf32, #tpu.memory_space<vmem>>, vector<1x4x1xf32>
    %16 = vector.broadcast %14 : vector<1x1x256xf32> to vector<1x4x256xf32>
    %17 = arith.mulf %6, %16 : vector<1x4x256xf32>
    %18 = vector.broadcast %15 : vector<1x4x1xf32> to vector<1x4x256xf32>
    %19 = arith.mulf %18, %17 : vector<1x4x256xf32>
    %c0_9 = arith.constant 0 : index
    %c0_10 = arith.constant 0 : index
    %c0_11 = arith.constant 0 : index
    %20 = vector.load %arg4[%c0_9, %c0_10, %c0_11] : memref<1x4x1xf32, #tpu.memory_space<vmem>>, vector<1x4x1xf32>
    %21 = vector.broadcast %20 : vector<1x4x1xf32> to vector<1x4x256xf32>
    %22 = arith.addf %19, %21 : vector<1x4x256xf32>
    %c0_12 = arith.constant 0 : index
    %c0_13 = arith.constant 0 : index
    %c0_14 = arith.constant 0 : index
    %23 = vector.load %arg5[%c0_12, %c0_13, %c0_14] : memref<1x4x256xf32, #tpu.memory_space<vmem>>, vector<1x4x256xf32>
    tpu.vector_store %arg5[%c0_12, %c0_13, %c0_14], %22 {strides = array<i32>} : memref<1x4x256xf32, #tpu.memory_space<vmem>>, vector<1x4x256xf32>,
    return
  }
  func.func @transform_0(%arg0: i32, %arg1: i32) -> (i32, i32, i32) {
    %c0_i32 = arith.constant 0 : i32
    %c0_i32_0 = arith.constant 0 : i32
    return %arg0, %c0_i32, %arg1 : i32, i32, i32
  }
  func.func @transform_1(%arg0: i32, %arg1: i32) -> (i32, i32, i32) {
    %c0_i32 = arith.constant 0 : i32
    %c0_i32_0 = arith.constant 0 : i32
    %c0_i32_1 = arith.constant 0 : i32
    %c0_i32_2 = arith.constant 0 : i32
    return %c0_i32, %c0_i32_0, %c0_i32_1 : i32, i32, i32
  }
  func.func @transform_2(%arg0: i32, %arg1: i32) -> (i32, i32, i32) {
    %c0_i32 = arith.constant 0 : i32
    %c0_i32_0 = arith.constant 0 : i32
    %c0_i32_1 = arith.constant 0 : i32
    %c0_i32_2 = arith.constant 0 : i32
    return %c0_i32, %c0_i32_0, %c0_i32_1 : i32, i32, i32
  }
  func.func @transform_3(%arg0: i32, %arg1: i32) -> (i32, i32, i32) {
    %c0_i32 = arith.constant 0 : i32
    %c0_i32_0 = arith.constant 0 : i32
    return %arg0, %c0_i32, %arg1 : i32, i32, i32
  }
}

</mosaic_0001>

<bundles_post_ra>
// kernel: tpu_custom_call.1
= control target key start
LH: loop header
LB: loop body
LE: loop exit
PB: predicated region body
PF: predicated region fallthrough
CT: control target
= control target key end

     0   :  { %8 = vsyncpa [#allocation3], 0  ;;  %s993_s0 = inlined_call_operand.hbm [shape: f32[2,4,256], index: 0, kind: input, shape index: {}]   ;;  %s994_s1 = inlined_call_operand.hbm [shape: f32[1,4,1], index: 1, kind: input, shape index: {}]   ;;  %s995_s2 = inlined_call_operand.hbm [shape: f32[1,4,1], index: 2, kind: input, shape index: {}]   ;;  %s996_s3 = inlined_call_operand.hbm [shape: f32[2,4,256], index: 3, kind: output, shape index: {}]  }
   0x1   :  { %10 = vsyncpa [#allocation3 + $0x1], 0 }
   0x2   :  { %11 = vsyncpa [#allocation6], 0 }
   0x3   :  { %12 = vsyncpa [#allocation4], 0 }
   0x4   :  { %14 = vsyncpa [#allocation4 + $0x1], 0  ;;  %s742_s12 = smov 0   ;;  %s744_s13 = smov 0  }
   0x5   :  { %s746_s14 = smov 0   ;;  %s748_s15 = smov 0  }
   0x6   :  { %s750_s16 = smov 0   ;;  %s752_s17 = smov 0  }
   0x7 LB: > { %s432_s18 = sadd.s32 4294967295, %s715_s17   ;;  %s433_s19 = sadd.s32 4294967294, %s715_s17   ;;  %s715_s17 = sphi %s752_s17, %s20_s17   ;;  %s711_s16 = sphi %s750_s16, %s1019_s16   ;;  %s707_s15 = sphi %s748_s15, %s1018_s15   ;;  %s703_s14 = sphi %s746_s14, %s1017_s14   ;;  %s699_s13 = sphi %s744_s13, %s1016_s13   ;;  %s695_s12 = sphi %s742_s12, %s1015_s12  }
   0x8   : > { %p54_p0 = scmp.ne.s32.totalorder %s699_s13, %s695_s12  ;;  %p776_p1 = scmp.eq.s32.totalorder %s432_s18, 0 }
   0x9   : > { %p780_p2 = scmp.eq.s32.totalorder %s432_s18, 1  ;;  %p128_p3 = scmp.eq.s32.totalorder %s433_s19, 1 }
   0xa   : > { %s1001_s20 = scalar_select %p776_p1, 1, 0 }
   0xb   : > { %s1002_s21 = scalar_select %p780_p2, 1, 0 }
   0xc   : > { %p786_p4 = por %p776_p1, %p54_p0  ;;  %p434_p5 = scmp.ge.s32.totalorder %s715_s17, 1 }
   0xd   : > { %p791_p6 = por %p128_p3, %p54_p0  ;;  %p135_p7 = scmp.lt.s32.totalorder %s715_s17, 3 }
   0xe   : > { %s1003_s22 = scalar_select %p786_p4, 1, 0 }
   0xf   : > { %s1004_s23 = scalar_select %p791_p6, 1, 0 }
  0x10   : > { %p796_p8 = pnand %p434_p5, %p135_p7  ;;  %s717_s25 = smov [#allocation5]  }
  0x11   : > { %s148_s26 = sshll.u32 %s717_s25, 4  ;;  %s718_s27 = smov [#allocation7]   ;;  %s149_s26 = int_to_ptr.vmem [resolvable:$true] %s148_s26 }
  0x12   : > { %s1005_s24 = scalar_select %p796_p8, 1, 0 }
  0x13   : > { %p465_p10 = pneg %p796_p8  ;;  %s159_s28 = sshll.u32 %s718_s27, 4  ;;  %s809_s28 = int_to_ptr.vmem [resolvable:$true] %s159_s28 }
  0x14   : > { %s543_s5 = scalar_lea.hbm %s994_s1, 64 }
  0x15   : > { %p805_p11 = pnand %p465_p10, %p776_p1  ;;  %p544_p12 = scmp.ne.s32.totalorder %s994_s1, %s543_s5 }
  0x16   : > { %p550_p5 = scmp.lt.u32.totalorder %s543_s5, %s994_s1 }
  0x17   : > { %p545_p13 = pneg %p805_p11 }
  0x19   : > { %p546_p0 = pnand %p545_p13, %p544_p12 }
  0x1b   : > { %p547_p3 = pneg %p546_p0 }
  0x1d   : > { %p552_p7 = pnand %p550_p5, %p547_p3 }
  0x1f   : > { %555 = shalt.err (!%p552_p7)
}
  0x20   : > { %s556_s10 = scalar_lea.vmem %s149_s26, 64  ;;  %p564_p1 = scmp.lt.s32.totalorder %s149_s26, %s149_s26 }
  0x21   : > { %p557_p10 = scmp.ne.s32.totalorder %s149_s26, %s556_s10  ;;  %p565_p4 = scmp.lt.s32.totalorder %s556_s10, %s556_s10 }
  0x23   : > { %p559_p9 = pnand %p557_p10, %p545_p13  ;;  %p566_p8 = por %p565_p4, %p564_p1 }
  0x25   : > { %p560_p6 = pneg %p559_p9 }
  0x27   : > { %p567_p2 = pnand %p566_p8, %p560_p6 }
  0x29   : > { %570 = shalt.err (!%p567_p2)
}
  0x2a   : > { %468 = dma.hbm_to_vmem [thread:$0]  (!%p805_p11), %s994_s1, 64, %s149_s26, [#allocation6]  }
  0x2b   : > { %s571_s27 = scalar_lea.hbm %s995_s2, 64 }
  0x2c   : > { %p572_p9 = scmp.ne.s32.totalorder %s995_s2, %s571_s27  ;;  %p578_p2 = scmp.lt.u32.totalorder %s571_s27, %s995_s2 }
  0x2e   : > { %p574_p1 = pnand %p572_p9, %p545_p13 }
  0x30   : > { %p575_p4 = pneg %p574_p1 }
  0x32   : > { %p580_p6 = pnand %p578_p2, %p575_p4 }
  0x34   : > { %583 = shalt.err (!%p580_p6)
}
  0x35   : > { %s584_s26 = scalar_lea.vmem %s809_s28, 64  ;;  %p592_p3 = scmp.lt.s32.totalorder %s809_s28, %s809_s28 }
  0x36   : > { %p585_p8 = scmp.ne.s32.totalorder %s809_s28, %s584_s26  ;;  %p593_p5 = scmp.lt.s32.totalorder %s584_s26, %s584_s26 }
  0x38   : > { %p587_p12 = pnand %p585_p8, %p545_p13  ;;  %p594_p7 = por %p593_p5, %p592_p3 }
  0x3a   : > { %p588_p0 = pneg %p587_p12 }
  0x3c   : > { %p595_p10 = pnand %p594_p7, %p588_p0 }
  0x3e   : > { %598 = shalt.err (!%p595_p10)
}
  0x3f   : > { %471 = dma.hbm_to_vmem [thread:$0]  (!%p805_p11), %s995_s2, 64, %s809_s28, [#allocation6]  }
  0x40   : > { %s32_s9 = sadd.s32 1, %s711_s16  ;;  %s41_s10 = sadd.s32 1, %s703_s14 }
  0x41   : > { %p34_p13 = scmp.ge.s32.totalorder %s32_s9, 2  ;;  %p48_p9 = scmp.ne.s32.totalorder %s703_s14, %s699_s13 }
  0x42   : > { %p49_p1 = scmp.eq.s32.totalorder %s715_s17, 0  ;;  %p482_p4 = scmp.lt.s32.totalorder %s715_s17, 2 }
  0x43   : > { %s1021_s9 = smov (%p34_p13, %s32_s9), 0  ;;  %p1007_p6 = scmp.ne.s32.totalorder %s1002_s21, 0 }
  0x44   : > { %p50_p2 = por %p49_p1, %p48_p9  ;;  %s36_s11 = ssub.s32 %s711_s16, %s1021_s9 }
  0x45   : > { %p868_p8 = por %p1007_p6, %p48_p9  ;;  %s170_s18 = sand.u32 1, %s703_s14  }
  0x46   : > { %p39_p12 = scmp.eq.s32.totalorder %s36_s11, 0  ;;  %s438_s28 = sshll.u32 %s170_s18, 3 }
  0x47   : > { %s451_s19 = sshll.u32 %s711_s16, 7  ;;  %s174_s21 = scalar_lea.vmem [#allocation2], %s438_s28 }
  0x48   : > { %s877_s25 = scalar_select %p39_p12, %s703_s14, %s41_s10  }
  0x49   : > { %s882_s4 = scalar_lea.hbm %s993_s0, %s451_s19  ;;  %s184_s5 = sshll.u32 %s174_s21, 4  ;;  %s890_s5 = int_to_ptr.vmem [resolvable:$true] %s184_s5 }
  0x4a   : > { %p886_p11 = pnand %p482_p4, %p50_p2  ;;  %s171_s26 = scalar_lea.sflag [#allocation3], %s170_s18 }
  0x4b   : > { %s599_s7 = scalar_lea.hbm %s882_s4, 128  ;;  %s604_s11 = scalar_lea.hbm %s993_s0, 256 }
  0x4c   : > { %p600_p0 = scmp.ne.s32.totalorder %s882_s4, %s599_s7  ;;  %p601_p3 = pneg %p886_p11 }
  0x4d   : > { %p605_p10 = scmp.lt.u32.totalorder %s882_s4, %s993_s0  ;;  %p606_p13 = scmp.lt.u32.totalorder %s604_s11, %s599_s7 }
  0x4e   : > { %p602_p5 = pnand %p601_p3, %p600_p0  ;;  %p608_p1 = scmp.lt.u32.totalorder %s599_s7, %s882_s4 }
  0x4f   : > { %p607_p9 = por %p606_p13, %p605_p10 }
  0x50   : > { %p603_p7 = pneg %p602_p5 }
  0x51   : > { %p609_p4 = por %p608_p1, %p607_p9 }
  0x53   : > { %p610_p2 = pnand %p609_p4, %p603_p7 }
  0x55   : > { %613 = shalt.err (!%p610_p2)
}
  0x56   : > { %s614_s18 = scalar_lea.vmem %s890_s5, 128  ;;  %s719_s27 = smov [#allocation2]  }
  0x57   : > { %p615_p6 = scmp.ne.s32.totalorder %s890_s5, %s614_s18  ;;  %s619_s30 = sshll.u32 %s719_s27, 4  ;;  %s620_s30 = int_to_ptr.vmem [resolvable:$false] %s619_s30 }
  0x58   : > { %s621_s21 = scalar_lea.vmem %s620_s30, 256  ;;  %p622_p5 = scmp.lt.s32.totalorder %s890_s5, %s620_s30 }
  0x59   : > { %p617_p12 = pnand %p615_p6, %p601_p3  ;;  %p623_p10 = scmp.lt.s32.totalorder %s621_s21, %s614_s18 }
  0x5b   : > { %p618_p0 = pneg %p617_p12  ;;  %p624_p13 = por %p623_p10, %p622_p5 }
  0x5d   : > { %p625_p9 = pnand %p624_p13, %p618_p0 }
  0x5f   : > { %628 = shalt.err (!%p625_p9)
}
  0x60   : > { %475 = dma.hbm_to_vmem [thread:$0]  (!%p886_p11), %s882_s4, 128, %s890_s5, %s171_s26  }
  0x61   : > { %p1010_p7 = scmp.ne.s32.totalorder %s1005_s24, 0 }
  0x62   : > { %s920_s7 = sand.u32 (!%p1010_p7), 1, %s699_s13   ;;  %p1011_p3 = scmp.ne.s32.totalorder (!%p1010_p7), %s1003_s22, 0 }
  0x63   : > { %193 = sbr.rel (%p1010_p7) target bundleno = 262 (0x106), region = 32  ;;  %s442_s8 = sshll.u32 (!%p1010_p7), %s920_s7, 3 }
  0x64   : > { %s196_s10 = scalar_lea.sflag (!%p1010_p7), [#allocation3], %s920_s7  ;;  %s199_s11 = scalar_lea.vmem (!%p1010_p7), [#allocation2], %s442_s8 }
  0x6a   : > { %682 = dma.done.wait (%p1011_p3), %s196_s10, 128  }
  0x6b   : > { %684 = vsyncadd (%p1011_p3), %s196_s10, 4294967168  ;;  %p1012_p11 = scmp.ne.s32.totalorder %s1001_s20, 0 }
  0x6d   : > { %686 = dma.done.wait (%p1012_p11), [#allocation6], 128  }
  0x6e   : > { %688 = vsyncadd (%p1012_p11), [#allocation6], 4294967168  ;;  %v720_v0 = vmov 0   ;;  %v283_v1 = vld [vmem:[#allocation5] sm:$0xf]  ;;  %v232_v3 = vld [vmem:[%s199_s11] sm:$0xff] }
  0x6f   : > { %537 = vset.pattern.permute.xlu0 %v720_v0  ;;  %v299_v2 = vld [vmem:[#allocation7] sm:$0xf]  ;;  %v234_v4 = vcombine.high %v232_v3, %v232_v3  ;;  %vm236_vm0 = vcmask 1043456   ;;  %s452_s20 = sshll.u32 %s707_s15, 7  ;;  %s229_s22 = scalar_lea.vmem [#allocation8], %s442_s8 }
  0x70   : > { %291 = vperm.xlu0 %537, %v283_v1   ;;  %v237_v5 = vsel %vm236_vm0, %v232_v3, 0.0  ;;  %s329_s24 = sshll.u32 %s229_s22, 4  ;;  %s944_s6 = scalar_lea.hbm %s996_s3, %s452_s20  ;;  %s946_s24 = int_to_ptr.vmem [resolvable:$true] %s329_s24 }
  0x71   : > { %v244_v6 = vsel %vm236_vm0, %v234_v4, 0.0  ;;  %v238_v7 = vrot.slane %v237_v5, 4  ;;  %s313_s26 = scalar_lea.sflag [#allocation4], %s920_s7  ;;  %s629_s28 = scalar_lea.vmem %s946_s24, 128 }
  0x72   : > { %v245_v8 = vrot.slane %v244_v6, 4  ;;  %p630_p1 = scmp.ne.s32.totalorder %s946_s24, %s629_s28  ;;  %s721_s15 = smov [#allocation8]  }
  0x73   : > { %v239_v9 = vadd.f32 %v238_v7, %v237_v5  ;;  %s633_s19 = sshll.u32 %s721_s15, 4  ;;  %s634_s19 = int_to_ptr.vmem [resolvable:$false] %s633_s19 }
  0x74   : > { %302 = vperm.xlu0 %537, %v299_v2   ;;  %v246_v10 = vadd.f32 %v245_v8, %v244_v6  ;;  %p631_p4 = pnand %p630_p1, %p868_p8  ;;  %s635_s18 = scalar_lea.vmem %s634_s19, 256 }
  0x75   : > { %v240_v11 = vrot.slane %v239_v9, 2  ;;  %p636_p6 = scmp.lt.s32.totalorder %s946_s24, %s634_s19  ;;  %p637_p12 = scmp.lt.s32.totalorder %s635_s18, %s629_s28 }
  0x76   : > { %v247_v12 = vrot.slane %v246_v10, 2  ;;  %p632_p2 = pneg %p631_p4 }
  0x77   : > { %v241_v13 = vadd.f32 %v240_v11, %v239_v9  ;;  %p638_p0 = por %p637_p12, %p636_p6 }
  0x78   : > { %v248_v14 = vadd.f32 %v247_v12, %v246_v10 }
  0x79   : > { %v242_v15 = vrot.slane %v241_v13, 1  ;;  %p639_p5 = pnand %p638_p0, %p632_p2 }
  0x7a   : > { %v249_v16 = vrot.slane %v248_v14, 1 }
  0x7b   : > { %v243_v17 = vadd.f32 %v242_v15, %v241_v13 }
  0x7c   : > { %v250_v18 = vadd.f32 %v249_v16, %v248_v14 }
  0x7d   : > { %v252_v19 = vmul.f32 0.25, %v243_v17 }
  0x7e   : > { %v253_v20 = vmul.f32 0.25, %v250_v18 }
  0x80   : > { %v256_v21 = vcombine.low %v252_v19, %v253_v20 }
  0x82   : > { %v258_v22 = vsub.f32 %v232_v3, %v256_v21 }
  0x84   : > { %v259_v23 = vmul.f32 %v258_v22, %v258_v22 }
  0x86   : > { %v261_v24 = vcombine.high %v259_v23, %v259_v23  ;;  %v263_v25 = vsel %vm236_vm0, %v259_v23, 0.0 }
  0x87   : > { %v264_v27 = vrot.slane %v263_v25, 4 }
  0x88   : > { %v270_v26 = vsel %vm236_vm0, %v261_v24, 0.0 }
  0x89   : > { %v271_v28 = vrot.slane %v270_v26, 4  ;;  %v265_v29 = vadd.f32 %v264_v27, %v263_v25 }
  0x8b   : > { %v272_v30 = vadd.f32 %v271_v28, %v270_v26  ;;  %v266_v31 = vrot.slane %v265_v29, 2 }
  0x8d   : > { %v273_v32 = vrot.slane %v272_v30, 2  ;;  %v267_v33 = vadd.f32 %v266_v31, %v265_v29 }
  0x8f   : > { %v274_v34 = vadd.f32 %v273_v32, %v272_v30  ;;  %v268_v35 = vrot.slane %v267_v33, 1 }
  0x91   : > { %v275_v36 = vrot.slane %v274_v34, 1  ;;  %v269_v37 = vadd.f32 %v268_v35, %v267_v33 }
  0x93   : > { %v276_v38 = vadd.f32 %v275_v36, %v274_v34  ;;  %v277_v39 = vmul.f32 0.25, %v269_v37 }
  0x95   : > { %v278_v40 = vmul.f32 0.25, %v276_v38  ;;  %v279_v41 = vadd.f32 1e-06, %v277_v39 }
  0x97   : > { %v280_v42 = vadd.f32 1e-06, %v278_v40  ;;  %539 = vrsqrt.f32 %v279_v41 }
  0x99   : > { %541 = vrsqrt.f32 %v280_v42 }
  0xa1   : > { %v540_v43 = vpop.eup %539 }
  0xa3   : > { %v542_v44 = vpop.eup %541 }
  0xa4   : > { %v286_v45 = vcombine.low %v540_v43, %v542_v44 }
  0xa6   : > { %v288_v46 = vmul.f32 %v286_v45, %v258_v22 }
  0xa8   : > { %v295_v47 = vcombine.high %v288_v46, %v288_v46 }
  0xef   : > { %v292_v48 = vpop.permute.xlu0 %291 }
  0xf0   : > { %v297_v49 = vmul.f32 %v292_v48, %v288_v46  ;;  %v298_v50 = vmul.f32 %v295_v47, %v292_v48 }
  0xf3   : > { %v303_v51 = vpop.permute.xlu0 %302 }
  0xf4   : > { %v305_v52 = vadd.f32 %v303_v51, %v297_v49  ;;  %v306_v53 = vadd.f32 %v303_v51, %v298_v50 }
  0xf6   : > { %v309_v54 = vcombine.low %v305_v52, %v306_v53 }
  0xf8   : > { %311 = vst [vmem:[%s229_s22] sm:$0xff] %v309_v54 }
  0xf9   : > { %642 = shalt.err (!%p639_p5)
}
  0xfa   : > { %s643_s27 = scalar_lea.hbm %s944_s6, 128  ;;  %s647_s7 = scalar_lea.hbm %s996_s3, 256 }
  0xfb   : > { %p644_p10 = scmp.ne.s32.totalorder %s944_s6, %s643_s27  ;;  %p648_p7 = scmp.lt.u32.totalorder %s944_s6, %s996_s3 }
  0xfc   : > { %p649_p3 = scmp.lt.u32.totalorder %s647_s7, %s643_s27  ;;  %p651_p1 = scmp.lt.u32.totalorder %s643_s27, %s944_s6 }
  0xfd   : > { %p645_p13 = pnand %p644_p10, %p868_p8 }
  0xfe   : > { %p650_p11 = por %p649_p3, %p648_p7 }
  0xff   : > { %p646_p9 = pneg %p645_p13 }
 0x100   : > { %p652_p4 = por %p651_p1, %p650_p11 }
 0x102   : > { %p653_p2 = pnand %p652_p4, %p646_p9 }
 0x104   : > { %656 = shalt.err (!%p653_p2)
}
 0x105   : > { %463 = dma.vmem_to_hbm [thread:$0]  (%p868_p8), %s946_s24, 128, %s944_s6, %s313_s26  }
 0x106 PF: > { %s341_s11 = sand.u32 1, %s695_s12   ;;  %p1013_p6 = scmp.ne.s32.totalorder %s1004_s23, 0 }
 0x107   : > { %p1014_p12 = scmp.ge.s32.totalorder %s715_s17, 2  ;;  %s342_s20 = scalar_lea.sflag [#allocation4], %s341_s11 }
 0x109   : > { %p477_p0 = pnand %p1014_p12, %p1013_p6 }
 0x10b   : > { %690 = dma.done.wait (!%p477_p0), %s342_s20, 128  }
 0x10c   : > { %692 = vsyncadd (!%p477_p0), %s342_s20, 4294967168  ;;  %s20_s17 = sadd.s32 1, %s715_s17   ;;  %s1015_s12 = smov %s699_s13 }
 0x10d   : > { %p17_p5 = scmp.ge.s32.totalorder %s20_s17, 4   ;;  %s1016_s13 = smov %s703_s14 }
 0x10e   : > { %s1017_s14 = smov %s877_s25  ;;  %s1018_s15 = smov %s711_s16 }
 0x10f   : > { %s1019_s16 = smov %s1021_s9  ;;  %19 = sbr.rel (!%p17_p5) target bundleno = 7 (0x7), region = 85 }
 0x116   :  { %347 = vsyncpa [#allocation3], 1 }
 0x117   :  { %349 = vsyncpa [#allocation3 + $0x1], 1 }
 0x118   :  { %350 = vsyncpa [#allocation6], 1 }
 0x119   :  { %351 = vsyncpa [#allocation4], 1 }
 0x11a   :  { %353 = vsyncpa [#allocation4 + $0x1], 1 }

</bundles_post_ra>
